<compile_context>
chip_gen: v5e
topology: v5e:2x2
jax: 0.10.0
libtpu: 0.0.40
codegen_flags: <defaults>
</compile_context>

<pallas_src>
import functools

import jax
import jax.numpy as jnp
from jax import lax
from jax.experimental import pallas as pl
from jax.experimental.pallas import tpu as pltpu


def _round_up(x, m):
    return ((x + m - 1) // m) * m


# --------------------------------------------------------------------------
# Phase 1: serial recurrence (i2h head only), time-blocked grid.
# --------------------------------------------------------------------------
def rnn_recur_kernel(x_ref, h0_ref, w_h_ref, b_h_ref,      # inputs
                     comb_ref, hfin_ref,                    # outputs
                     h_scr, comb_scr,                       # scratch
                     *, seq_len, block_t, input_size):
    """One grid step == one block of `block_t` RNN time steps.

    x_ref    : (Tt, B, I)     inputs for this time block (pipelined)
    h0_ref   : (B, H)         initial hidden (read only on the first block)
    w_h_ref  : (I+H, H)       fused i2h weight (resident)
    b_h_ref  : (1, H)         i2h bias (resident)
    comb_ref : (Tt, B, I+H)   streamed-out [x_t | h_t] rows for phase 2
    hfin_ref : (B, H)         final hidden (written on the last block only)
    h_scr    : (B, H)         VMEM hidden carry across blocks
    comb_scr : (B, I+H)       VMEM staging buffer -> one dot per step
    """
    tb = pl.program_id(0)
    n_blocks = pl.num_programs(0)

    @pl.when(tb == 0)
    def _():
        h_scr[...] = h0_ref[...]

    h_init = h_scr[...]                       # keep the carry in vregs
    mask_tail = (seq_len % block_t) != 0      # static: only if T was padded

    def step(tt, h):
        # combined = [x_t | h_t] assembled in VMEM -> a single MXU dot.
        comb_scr[:, :input_size] = x_ref[tt]
        comb_scr[:, input_size:] = h
        comb = comb_scr[...]
        comb_ref[tt] = comb                   # stream combined out for phase 2
        new_h = (jnp.dot(comb, w_h_ref[...],
                         preferred_element_type=jnp.float32)
                 + b_h_ref[...])
        if mask_tail:
            # Padded steps beyond the real sequence length hold the state.
            valid = tb * block_t + tt < seq_len
            new_h = jnp.where(valid, new_h, h)
        return new_h

    h_out = lax.fori_loop(0, block_t, step, h_init, unroll=True)
    h_scr[...] = h_out

    @pl.when(tb == n_blocks - 1)
    def _():
        hfin_ref[...] = h_out


# --------------------------------------------------------------------------
# Phase 2: non-recurrent i2o head + log_softmax, parallel & lane-dense.
# --------------------------------------------------------------------------
def rnn_head_kernel(comb_ref, w_o_ref, b_o_ref, out_ref, *, output_size):
    """comb_ref: (Tt, B, I+H); w_o_ref: (I+H, O_pad); out_ref: (Tt, B, O_pad)."""
    bt, bb, c = comb_ref.shape
    o_pad = out_ref.shape[-1]

    comb = comb_ref[...].reshape(bt * bb, c)          # merge (Tt, B) rows
    logits = (jnp.dot(comb, w_o_ref[...],
                      preferred_element_type=jnp.float32)
              + b_o_ref[...])                         # (Tt*B, O_pad)

    # Exclude the zero-padded logit columns from the softmax normalizer.
    lane = lax.broadcasted_iota(jnp.int32, logits.shape, 1)
    logits = jnp.where(lane < output_size, logits, -jnp.inf)

    m = jnp.max(logits, axis=1, keepdims=True)
    shifted = logits - m
    lse = jnp.log(jnp.sum(jnp.exp(shifted), axis=1, keepdims=True))
    out = shifted - lse

    out_ref[...] = out.reshape(bt, bb, o_pad).astype(out_ref.dtype)


# --------------------------------------------------------------------------
# Parameter prep (one-time, outside the hot path).
# --------------------------------------------------------------------------
def prepare_params(w_i2h, b_i2h, w_i2o, b_i2o, input_size):
    """Weights in jnp convention: w_i2h (I+H, H), w_i2o (I+H, O); y = x @ W + b."""
    hidden_size = w_i2h.shape[1]
    output_size = w_i2o.shape[1]
    o_pad = max(128, _round_up(output_size, 128))     # lane-dense output head

    w_o_pad = jnp.zeros((w_i2o.shape[0], o_pad), jnp.float32)
    w_o_pad = w_o_pad.at[:, :output_size].set(w_i2o.astype(jnp.float32))
    b_o_pad = jnp.zeros((1, o_pad), jnp.float32)
    b_o_pad = b_o_pad.at[0, :output_size].set(b_i2o.astype(jnp.float32))

    return {
        "w_h": w_i2h.astype(jnp.float32),              # (I+H, H)
        "b_h": b_i2h.astype(jnp.float32)[None, :],     # (1, H)
        "w_o": w_o_pad,                                # (I+H, O_pad)
        "b_o": b_o_pad,                                # (1, O_pad)
        "input_size": input_size,
        "hidden_size": hidden_size,
        "output_size": output_size,
        "o_pad": o_pad,
    }


# --------------------------------------------------------------------------
# Wrappers.
# --------------------------------------------------------------------------
def rnn_forward_seq(xs, h0, params, *, time_block=32):
    """Run the RNN over a whole sequence.

    xs: (T, B, input_size), h0: (B, hidden_size)
    Returns (log_softmax outputs (T, B, output_size), final hidden (B, H)).
    """
    T, B, I = xs.shape
    H = params["hidden_size"]
    O = params["output_size"]
    O_pad = params["o_pad"]
    C = I + H

    B_pad = max(8, _round_up(B, 8))          # sublane-dense batch
    Tt = max(1, min(time_block, T))          # time block size
    T_pad = _round_up(T, Tt)
    n_blocks = T_pad // Tt

    xs_p = xs
    if (T_pad, B_pad) != (T, B):
        xs_p = jnp.pad(xs, ((0, T_pad - T), (0, B_pad - B), (0, 0)))
    h0_p = h0 if B_pad == B else jnp.pad(h0, ((0, B_pad - B), (0, 0)))

    # ---- Phase 1: serial recurrence (only the i2h head in the loop). ----
    recur = functools.partial(rnn_recur_kernel,
                              seq_len=T, block_t=Tt, input_size=I)
    comb_all, h_final = pl.pallas_call(
        recur,
        out_shape=(jax.ShapeDtypeStruct((T_pad, B_pad, C), jnp.float32),
                   jax.ShapeDtypeStruct((B_pad, H), jnp.float32)),
        grid=(n_blocks,),
        in_specs=[
            pl.BlockSpec((Tt, B_pad, I), lambda tb: (tb, 0, 0)),   # x block
            pl.BlockSpec((B_pad, H), lambda tb: (0, 0)),           # h0 (read once)
            pl.BlockSpec((C, H), lambda tb: (0, 0)),               # W_i2h resident
            pl.BlockSpec((1, H), lambda tb: (0, 0)),               # b_i2h resident
        ],
        out_specs=(
            pl.BlockSpec((Tt, B_pad, C), lambda tb: (tb, 0, 0)),   # combined stream
            pl.BlockSpec((B_pad, H), lambda tb: (0, 0)),           # final hidden
        ),
        scratch_shapes=[
            pltpu.VMEM((B_pad, H), jnp.float32),    # hidden carry
            pltpu.VMEM((B_pad, C), jnp.float32),    # combined staging buffer
        ],
        compiler_params=pltpu.CompilerParams(
            dimension_semantics=("arbitrary",)),    # time recurrence
    )(xs_p, h0_p, params["w_h"], params["b_h"])

    # ---- Phase 2: output head + log_softmax (parallel, lane-dense). ----
    head = functools.partial(rnn_head_kernel, output_size=O)
    out_pad = pl.pallas_call(
        head,
        out_shape=jax.ShapeDtypeStruct((T_pad, B_pad, O_pad), jnp.float32),
        grid=(n_blocks,),
        in_specs=[
            pl.BlockSpec((Tt, B_pad, C), lambda tb: (tb, 0, 0)),
            pl.BlockSpec((C, O_pad), lambda tb: (0, 0)),           # W_i2o resident
            pl.BlockSpec((1, O_pad), lambda tb: (0, 0)),           # b_i2o resident
        ],
        out_specs=pl.BlockSpec((Tt, B_pad, O_pad), lambda tb: (tb, 0, 0)),
        compiler_params=pltpu.CompilerParams(
            dimension_semantics=("parallel",)),
    )(comb_all, params["w_o"], params["b_o"])

    return out_pad[:T, :B, :O], h_final[:B]


def rnn_forward(x, h, params):
    """Single-step forward, exactly the PyTorch module's forward(input, hidden)."""
    outs, h_new = rnn_forward_seq(x[None], h, params, time_block=1)
    return outs[0], h_new


# --------------------------------------------------------------------------
if __name__ == "__main__":
    batch = 2
    input_size = 16
    hidden_size = 32
    output_size = 8
    seq_len = 8

    key = jax.random.PRNGKey(0)
    kx, k1, k2, k3, k4 = jax.random.split(key, 5)

    # Deterministic init mimicking nn.Linear's U(-1/sqrt(fan_in), 1/sqrt(fan_in)).
    fan_in = input_size + hidden_size
    bound = 1.0 / (fan_in ** 0.5)
    w_i2h = jax.random.uniform(k1, (fan_in, hidden_size), jnp.float32, -bound, bound)
    b_i2h = jax.random.uniform(k2, (hidden_size,), jnp.float32, -bound, bound)
    w_i2o = jax.random.uniform(k3, (fan_in, output_size), jnp.float32, -bound, bound)
    b_i2o = jax.random.uniform(k4, (output_size,), jnp.float32, -bound, bound)

    params = prepare_params(w_i2h, b_i2h, w_i2o, b_i2o, input_size)

    xs = jax.random.normal(kx, (seq_len, batch, input_size), jnp.float32)
    h0 = jnp.zeros((batch, hidden_size), jnp.float32)  # init_hidden()

    # Full sequence, one serial launch + one parallel launch.
    outs, h_final = rnn_forward_seq(xs, h0, params)
    jax.block_until_ready((outs, h_final))

    # Remainder path (T not a multiple of the time block) to exercise masking.
    outs_r, h_final_r = rnn_forward_seq(xs, h0, params, time_block=5)
    jax.block_until_ready((outs_r, h_final_r))

    # Single-step call (identical to the module forward).
    out1, h1 = rnn_forward(xs[0], h0, params)
    jax.block_until_ready((out1, h1))

    # Reference: plain-JAX unroll of the PyTorch forward.
    def ref_step(h, x):
        combined = jnp.concatenate([x, h], axis=1)
        h_new = combined @ w_i2h + b_i2h
        logits = combined @ w_i2o + b_i2o
        return h_new, jax.nn.log_softmax(logits, axis=1)

    h_ref = h0
    ref_outs = []
    for t in range(seq_len):
        h_ref, o_t = ref_step(h_ref, xs[t])
        ref_outs.append(o_t)
    ref_outs = jnp.stack(ref_outs)
    ref_h1, ref_out1 = ref_step(h0, xs[0])

    assert jnp.allclose(outs, ref_outs, atol=1e-5, rtol=1e-5)
    assert jnp.allclose(h_final, h_ref, atol=1e-5, rtol=1e-5)
    assert jnp.allclose(outs_r, ref_outs, atol=1e-5, rtol=1e-5)
    assert jnp.allclose(h_final_r, h_ref, atol=1e-5, rtol=1e-5)
    assert jnp.allclose(out1, ref_out1, atol=1e-5, rtol=1e-5)
    assert jnp.allclose(h1, ref_h1, atol=1e-5, rtol=1e-5)

    print("KERNEL_OK")
</pallas_src>

<mosaic_0001>
module attributes {stable_mosaic.version = 11 : i64} {
  func.func @rnn_recur_kernel(%arg0: i32, %arg1: memref<8x8x16xf32, #tpu.memory_space<vmem>>, %arg2: memref<8x32xf32, #tpu.memory_space<vmem>>, %arg3: memref<48x32xf32, #tpu.memory_space<vmem>>, %arg4: memref<1x32xf32, #tpu.memory_space<vmem>>, %arg5: memref<8x8x48xf32, #tpu.memory_space<vmem>>, %arg6: memref<8x32xf32, #tpu.memory_space<vmem>>, %arg7: memref<8x32xf32, #tpu.memory_space<vmem>>, %arg8: memref<8x48xf32, #tpu.memory_space<vmem>>) attributes {dimension_semantics = [#tpu.dimension_semantics<arbitrary>], iteration_bounds = array<i64: 1>, scalar_prefetch = 0 : i64, scratch_operands = 2 : i64, tpu.core_type = #tpu.core_type<tc>, window_params = [{transform_indices = @transform_0, window_bounds = array<i64: 8, 8, 16>}, {pipeline_mode = #tpu.pipeline_mode<synchronous>, transform_indices = @transform_1, window_bounds = array<i64: 8, 32>}, {pipeline_mode = #tpu.pipeline_mode<synchronous>, transform_indices = @transform_2, window_bounds = array<i64: 48, 32>}, {pipeline_mode = #tpu.pipeline_mode<synchronous>, transform_indices = @transform_3, window_bounds = array<i64: 1, 32>}, {transform_indices = @transform_4, window_bounds = array<i64: 8, 8, 48>}, {pipeline_mode = #tpu.pipeline_mode<synchronous>, transform_indices = @transform_5, window_bounds = array<i64: 8, 32>}]} {
    %c0_i32 = arith.constant 0 : i32
    %0 = arith.cmpi eq, %arg0, %c0_i32 : i32
    %1 = arith.extui %0 : i1 to i32
    %c0_i32_0 = arith.constant 0 : i32
    %2 = arith.cmpi ne, %1, %c0_i32_0 : i32
    scf.if %2 {
      %c0_125 = arith.constant 0 : index
      %c0_126 = arith.constant 0 : index
      %128 = vector.load %arg2[%c0_125, %c0_126] : memref<8x32xf32, #tpu.memory_space<vmem>>, vector<8x32xf32>
      %c0_127 = arith.constant 0 : index
      %c0_128 = arith.constant 0 : index
      %129 = vector.load %arg7[%c0_127, %c0_128] : memref<8x32xf32, #tpu.memory_space<vmem>>, vector<8x32xf32>
      tpu.vector_store %arg7[%c0_127, %c0_128], %128 {strides = array<i32>} : memref<8x32xf32, #tpu.memory_space<vmem>>, vector<8x32xf32>,
    } else {
    }
    %c0 = arith.constant 0 : index
    %c0_1 = arith.constant 0 : index
    %3 = vector.load %arg7[%c0, %c0_1] : memref<8x32xf32, #tpu.memory_space<vmem>>, vector<8x32xf32>
    %c0_i32_2 = arith.constant 0 : i32
    %4 = arith.index_cast %c0_i32_2 : i32 to index
    %c0_3 = arith.constant 0 : index
    %c0_4 = arith.constant 0 : index
    %5 = vector.load %arg1[%4, %c0_3, %c0_4] : memref<8x8x16xf32, #tpu.memory_space<vmem>>, vector<1x8x16xf32>
    %6 = vector.shape_cast %5 : vector<1x8x16xf32> to vector<8x16xf32>
    %c0_5 = arith.constant 0 : index
    %c0_6 = arith.constant 0 : index
    %7 = vector.load %arg8[%c0_5, %c0_6] : memref<8x48xf32, #tpu.memory_space<vmem>>, vector<8x16xf32>
    tpu.vector_store %arg8[%c0_5, %c0_6], %6 {strides = array<i32>} : memref<8x48xf32, #tpu.memory_space<vmem>>, vector<8x16xf32>,
    %c0_7 = arith.constant 0 : index
    %c16 = arith.constant 16 : index
    %8 = vector.load %arg8[%c0_7, %c16] : memref<8x48xf32, #tpu.memory_space<vmem>>, vector<8x32xf32>
    tpu.vector_store %arg8[%c0_7, %c16], %3 {strides = array<i32>} : memref<8x48xf32, #tpu.memory_space<vmem>>, vector<8x32xf32>,
    %c0_8 = arith.constant 0 : index
    %c0_9 = arith.constant 0 : index
    %9 = vector.load %arg8[%c0_8, %c0_9] : memref<8x48xf32, #tpu.memory_space<vmem>>, vector<8x48xf32>
    %10 = arith.index_cast %c0_i32_2 : i32 to index
    %c0_10 = arith.constant 0 : index
    %c0_11 = arith.constant 0 : index
    %11 = vector.load %arg5[%10, %c0_10, %c0_11] : memref<8x8x48xf32, #tpu.memory_space<vmem>>, vector<1x8x48xf32>
    %12 = vector.shape_cast %11 : vector<1x8x48xf32> to vector<8x48xf32>
    %13 = vector.shape_cast %9 : vector<8x48xf32> to vector<1x8x48xf32>
    tpu.vector_store %arg5[%10, %c0_10, %c0_11], %13 {strides = array<i32>} : memref<8x8x48xf32, #tpu.memory_space<vmem>>, vector<1x8x48xf32>,
    %c0_12 = arith.constant 0 : index
    %c0_13 = arith.constant 0 : index
    %14 = vector.load %arg3[%c0_12, %c0_13] : memref<48x32xf32, #tpu.memory_space<vmem>>, vector<48x32xf32>
    %cst = arith.constant dense<0.000000e+00> : vector<8x32xf32>
    %15 = tpu.matmul %9, %14, %cst {dimension_numbers = #tpu.dot_dimension_numbers<[1], [0], [0], [1], [0, 0, 1, 1], [], []>} : vector<8x48xf32>, vector<48x32xf32>, vector<8x32xf32> -> vector<8x32xf32>
    %c0_14 = arith.constant 0 : index
    %c0_15 = arith.constant 0 : index
    %16 = vector.load %arg4[%c0_14, %c0_15] : memref<1x32xf32, #tpu.memory_space<vmem>>, vector<1x32xf32>
    %17 = vector.broadcast %16 : vector<1x32xf32> to vector<8x32xf32>
    %18 = arith.addf %15, %17 : vector<8x32xf32>
    %c1_i32 = arith.constant 1 : i32
    %19 = arith.index_cast %c1_i32 : i32 to index
    %c0_16 = arith.constant 0 : index
    %c0_17 = arith.constant 0 : index
    %20 = vector.load %arg1[%19, %c0_16, %c0_17] : memref<8x8x16xf32, #tpu.memory_space<vmem>>, vector<1x8x16xf32>
    %21 = vector.shape_cast %20 : vector<1x8x16xf32> to vector<8x16xf32>
    %c0_18 = arith.constant 0 : index
    %c0_19 = arith.constant 0 : index
    %22 = vector.load %arg8[%c0_18, %c0_19] : memref<8x48xf32, #tpu.memory_space<vmem>>, vector<8x16xf32>
    tpu.vector_store %arg8[%c0_18, %c0_19], %21 {strides = array<i32>} : memref<8x48xf32, #tpu.memory_space<vmem>>, vector<8x16xf32>,
    %c0_20 = arith.constant 0 : index
    %c16_21 = arith.constant 16 : index
    %23 = vector.load %arg8[%c0_20, %c16_21] : memref<8x48xf32, #tpu.memory_space<vmem>>, vector<8x32xf32>
    tpu.vector_store %arg8[%c0_20, %c16_21], %18 {strides = array<i32>} : memref<8x48xf32, #tpu.memory_space<vmem>>, vector<8x32xf32>,
    %c0_22 = arith.constant 0 : index
    %c0_23 = arith.constant 0 : index
    %24 = vector.load %arg8[%c0_22, %c0_23] : memref<8x48xf32, #tpu.memory_space<vmem>>, vector<8x48xf32>
    %25 = arith.index_cast %c1_i32 : i32 to index
    %c0_24 = arith.constant 0 : index
    %c0_25 = arith.constant 0 : index
    %26 = vector.load %arg5[%25, %c0_24, %c0_25] : memref<8x8x48xf32, #tpu.memory_space<vmem>>, vector<1x8x48xf32>
    %27 = vector.shape_cast %26 : vector<1x8x48xf32> to vector<8x48xf32>
    %28 = vector.shape_cast %24 : vector<8x48xf32> to vector<1x8x48xf32>
    tpu.vector_store %arg5[%25, %c0_24, %c0_25], %28 {strides = array<i32>} : memref<8x8x48xf32, #tpu.memory_space<vmem>>, vector<1x8x48xf32>,
    %c0_26 = arith.constant 0 : index
    %c0_27 = arith.constant 0 : index
    %29 = vector.load %arg3[%c0_26, %c0_27] : memref<48x32xf32, #tpu.memory_space<vmem>>, vector<48x32xf32>
    %cst_28 = arith.constant dense<0.000000e+00> : vector<8x32xf32>
    %30 = tpu.matmul %24, %29, %cst_28 {dimension_numbers = #tpu.dot_dimension_numbers<[1], [0], [0], [1], [0, 0, 1, 1], [], []>} : vector<8x48xf32>, vector<48x32xf32>, vector<8x32xf32> -> vector<8x32xf32>
    %c0_29 = arith.constant 0 : index
    %c0_30 = arith.constant 0 : index
    %31 = vector.load %arg4[%c0_29, %c0_30] : memref<1x32xf32, #tpu.memory_space<vmem>>, vector<1x32xf32>
    %32 = vector.broadcast %31 : vector<1x32xf32> to vector<8x32xf32>
    %33 = arith.addf %30, %32 : vector<8x32xf32>
    %c2_i32 = arith.constant 2 : i32
    %34 = arith.index_cast %c2_i32 : i32 to index
    %c0_31 = arith.constant 0 : index
    %c0_32 = arith.constant 0 : index
    %35 = vector.load %arg1[%34, %c0_31, %c0_32] : memref<8x8x16xf32, #tpu.memory_space<vmem>>, vector<1x8x16xf32>
    %36 = vector.shape_cast %35 : vector<1x8x16xf32> to vector<8x16xf32>
    %c0_33 = arith.constant 0 : index
    %c0_34 = arith.constant 0 : index
    %37 = vector.load %arg8[%c0_33, %c0_34] : memref<8x48xf32, #tpu.memory_space<vmem>>, vector<8x16xf32>
    tpu.vector_store %arg8[%c0_33, %c0_34], %36 {strides = array<i32>} : memref<8x48xf32, #tpu.memory_space<vmem>>, vector<8x16xf32>,
    %c0_35 = arith.constant 0 : index
    %c16_36 = arith.constant 16 : index
    %38 = vector.load %arg8[%c0_35, %c16_36] : memref<8x48xf32, #tpu.memory_space<vmem>>, vector<8x32xf32>
    tpu.vector_store %arg8[%c0_35, %c16_36], %33 {strides = array<i32>} : memref<8x48xf32, #tpu.memory_space<vmem>>, vector<8x32xf32>,
    %c0_37 = arith.constant 0 : index
    %c0_38 = arith.constant 0 : index
    %39 = vector.load %arg8[%c0_37, %c0_38] : memref<8x48xf32, #tpu.memory_space<vmem>>, vector<8x48xf32>
    %40 = arith.index_cast %c2_i32 : i32 to index
    %c0_39 = arith.constant 0 : index
    %c0_40 = arith.constant 0 : index
    %41 = vector.load %arg5[%40, %c0_39, %c0_40] : memref<8x8x48xf32, #tpu.memory_space<vmem>>, vector<1x8x48xf32>
    %42 = vector.shape_cast %41 : vector<1x8x48xf32> to vector<8x48xf32>
    %43 = vector.shape_cast %39 : vector<8x48xf32> to vector<1x8x48xf32>
    tpu.vector_store %arg5[%40, %c0_39, %c0_40], %43 {strides = array<i32>} : memref<8x8x48xf32, #tpu.memory_space<vmem>>, vector<1x8x48xf32>,
    %c0_41 = arith.constant 0 : index
    %c0_42 = arith.constant 0 : index
    %44 = vector.load %arg3[%c0_41, %c0_42] : memref<48x32xf32, #tpu.memory_space<vmem>>, vector<48x32xf32>
    %cst_43 = arith.constant dense<0.000000e+00> : vector<8x32xf32>
    %45 = tpu.matmul %39, %44, %cst_43 {dimension_numbers = #tpu.dot_dimension_numbers<[1], [0], [0], [1], [0, 0, 1, 1], [], []>} : vector<8x48xf32>, vector<48x32xf32>, vector<8x32xf32> -> vector<8x32xf32>
    %c0_44 = arith.constant 0 : index
    %c0_45 = arith.constant 0 : index
    %46 = vector.load %arg4[%c0_44, %c0_45] : memref<1x32xf32, #tpu.memory_space<vmem>>, vector<1x32xf32>
    %47 = vector.broadcast %46 : vector<1x32xf32> to vector<8x32xf32>
    %48 = arith.addf %45, %47 : vector<8x32xf32>
    %c3_i32 = arith.constant 3 : i32
    %49 = arith.index_cast %c3_i32 : i32 to index
    %c0_46 = arith.constant 0 : index
    %c0_47 = arith.constant 0 : index
    %50 = vector.load %arg1[%49, %c0_46, %c0_47] : memref<8x8x16xf32, #tpu.memory_space<vmem>>, vector<1x8x16xf32>
    %51 = vector.shape_cast %50 : vector<1x8x16xf32> to vector<8x16xf32>
    %c0_48 = arith.constant 0 : index
    %c0_49 = arith.constant 0 : index
    %52 = vector.load %arg8[%c0_48, %c0_49] : memref<8x48xf32, #tpu.memory_space<vmem>>, vector<8x16xf32>
    tpu.vector_store %arg8[%c0_48, %c0_49], %51 {strides = array<i32>} : memref<8x48xf32, #tpu.memory_space<vmem>>, vector<8x16xf32>,
    %c0_50 = arith.constant 0 : index
    %c16_51 = arith.constant 16 : index
    %53 = vector.load %arg8[%c0_50, %c16_51] : memref<8x48xf32, #tpu.memory_space<vmem>>, vector<8x32xf32>
    tpu.vector_store %arg8[%c0_50, %c16_51], %48 {strides = array<i32>} : memref<8x48xf32, #tpu.memory_space<vmem>>, vector<8x32xf32>,
    %c0_52 = arith.constant 0 : index
    %c0_53 = arith.constant 0 : index
    %54 = vector.load %arg8[%c0_52, %c0_53] : memref<8x48xf32, #tpu.memory_space<vmem>>, vector<8x48xf32>
    %55 = arith.index_cast %c3_i32 : i32 to index
    %c0_54 = arith.constant 0 : index
    %c0_55 = arith.constant 0 : index
    %56 = vector.load %arg5[%55, %c0_54, %c0_55] : memref<8x8x48xf32, #tpu.memory_space<vmem>>, vector<1x8x48xf32>
    %57 = vector.shape_cast %56 : vector<1x8x48xf32> to vector<8x48xf32>
    %58 = vector.shape_cast %54 : vector<8x48xf32> to vector<1x8x48xf32>
    tpu.vector_store %arg5[%55, %c0_54, %c0_55], %58 {strides = array<i32>} : memref<8x8x48xf32, #tpu.memory_space<vmem>>, vector<1x8x48xf32>,
    %c0_56 = arith.constant 0 : index
    %c0_57 = arith.constant 0 : index
    %59 = vector.load %arg3[%c0_56, %c0_57] : memref<48x32xf32, #tpu.memory_space<vmem>>, vector<48x32xf32>
    %cst_58 = arith.constant dense<0.000000e+00> : vector<8x32xf32>
    %60 = tpu.matmul %54, %59, %cst_58 {dimension_numbers = #tpu.dot_dimension_numbers<[1], [0], [0], [1], [0, 0, 1, 1], [], []>} : vector<8x48xf32>, vector<48x32xf32>, vector<8x32xf32> -> vector<8x32xf32>
    %c0_59 = arith.constant 0 : index
    %c0_60 = arith.constant 0 : index
    %61 = vector.load %arg4[%c0_59, %c0_60] : memref<1x32xf32, #tpu.memory_space<vmem>>, vector<1x32xf32>
    %62 = vector.broadcast %61 : vector<1x32xf32> to vector<8x32xf32>
    %63 = arith.addf %60, %62 : vector<8x32xf32>
    %c4_i32 = arith.constant 4 : i32
    %64 = arith.index_cast %c4_i32 : i32 to index
    %c0_61 = arith.constant 0 : index
    %c0_62 = arith.constant 0 : index
    %65 = vector.load %arg1[%64, %c0_61, %c0_62] : memref<8x8x16xf32, #tpu.memory_space<vmem>>, vector<1x8x16xf32>
    %66 = vector.shape_cast %65 : vector<1x8x16xf32> to vector<8x16xf32>
    %c0_63 = arith.constant 0 : index
    %c0_64 = arith.constant 0 : index
    %67 = vector.load %arg8[%c0_63, %c0_64] : memref<8x48xf32, #tpu.memory_space<vmem>>, vector<8x16xf32>
    tpu.vector_store %arg8[%c0_63, %c0_64], %66 {strides = array<i32>} : memref<8x48xf32, #tpu.memory_space<vmem>>, vector<8x16xf32>,
    %c0_65 = arith.constant 0 : index
    %c16_66 = arith.constant 16 : index
    %68 = vector.load %arg8[%c0_65, %c16_66] : memref<8x48xf32, #tpu.memory_space<vmem>>, vector<8x32xf32>
    tpu.vector_store %arg8[%c0_65, %c16_66], %63 {strides = array<i32>} : memref<8x48xf32, #tpu.memory_space<vmem>>, vector<8x32xf32>,
    %c0_67 = arith.constant 0 : index
    %c0_68 = arith.constant 0 : index
    %69 = vector.load %arg8[%c0_67, %c0_68] : memref<8x48xf32, #tpu.memory_space<vmem>>, vector<8x48xf32>
    %70 = arith.index_cast %c4_i32 : i32 to index
    %c0_69 = arith.constant 0 : index
    %c0_70 = arith.constant 0 : index
    %71 = vector.load %arg5[%70, %c0_69, %c0_70] : memref<8x8x48xf32, #tpu.memory_space<vmem>>, vector<1x8x48xf32>
    %72 = vector.shape_cast %71 : vector<1x8x48xf32> to vector<8x48xf32>
    %73 = vector.shape_cast %69 : vector<8x48xf32> to vector<1x8x48xf32>
    tpu.vector_store %arg5[%70, %c0_69, %c0_70], %73 {strides = array<i32>} : memref<8x8x48xf32, #tpu.memory_space<vmem>>, vector<1x8x48xf32>,
    %c0_71 = arith.constant 0 : index
    %c0_72 = arith.constant 0 : index
    %74 = vector.load %arg3[%c0_71, %c0_72] : memref<48x32xf32, #tpu.memory_space<vmem>>, vector<48x32xf32>
    %cst_73 = arith.constant dense<0.000000e+00> : vector<8x32xf32>
    %75 = tpu.matmul %69, %74, %cst_73 {dimension_numbers = #tpu.dot_dimension_numbers<[1], [0], [0], [1], [0, 0, 1, 1], [], []>} : vector<8x48xf32>, vector<48x32xf32>, vector<8x32xf32> -> vector<8x32xf32>
    %c0_74 = arith.constant 0 : index
    %c0_75 = arith.constant 0 : index
    %76 = vector.load %arg4[%c0_74, %c0_75] : memref<1x32xf32, #tpu.memory_space<vmem>>, vector<1x32xf32>
    %77 = vector.broadcast %76 : vector<1x32xf32> to vector<8x32xf32>
    %78 = arith.addf %75, %77 : vector<8x32xf32>
    %c5_i32 = arith.constant 5 : i32
    %79 = arith.index_cast %c5_i32 : i32 to index
    %c0_76 = arith.constant 0 : index
    %c0_77 = arith.constant 0 : index
    %80 = vector.load %arg1[%79, %c0_76, %c0_77] : memref<8x8x16xf32, #tpu.memory_space<vmem>>, vector<1x8x16xf32>
    %81 = vector.shape_cast %80 : vector<1x8x16xf32> to vector<8x16xf32>
    %c0_78 = arith.constant 0 : index
    %c0_79 = arith.constant 0 : index
    %82 = vector.load %arg8[%c0_78, %c0_79] : memref<8x48xf32, #tpu.memory_space<vmem>>, vector<8x16xf32>
    tpu.vector_store %arg8[%c0_78, %c0_79], %81 {strides = array<i32>} : memref<8x48xf32, #tpu.memory_space<vmem>>, vector<8x16xf32>,
    %c0_80 = arith.constant 0 : index
    %c16_81 = arith.constant 16 : index
    %83 = vector.load %arg8[%c0_80, %c16_81] : memref<8x48xf32, #tpu.memory_space<vmem>>, vector<8x32xf32>
    tpu.vector_store %arg8[%c0_80, %c16_81], %78 {strides = array<i32>} : memref<8x48xf32, #tpu.memory_space<vmem>>, vector<8x32xf32>,
    %c0_82 = arith.constant 0 : index
    %c0_83 = arith.constant 0 : index
    %84 = vector.load %arg8[%c0_82, %c0_83] : memref<8x48xf32, #tpu.memory_space<vmem>>, vector<8x48xf32>
    %85 = arith.index_cast %c5_i32 : i32 to index
    %c0_84 = arith.constant 0 : index
    %c0_85 = arith.constant 0 : index
    %86 = vector.load %arg5[%85, %c0_84, %c0_85] : memref<8x8x48xf32, #tpu.memory_space<vmem>>, vector<1x8x48xf32>
    %87 = vector.shape_cast %86 : vector<1x8x48xf32> to vector<8x48xf32>
    %88 = vector.shape_cast %84 : vector<8x48xf32> to vector<1x8x48xf32>
    tpu.vector_store %arg5[%85, %c0_84, %c0_85], %88 {strides = array<i32>} : memref<8x8x48xf32, #tpu.memory_space<vmem>>, vector<1x8x48xf32>,
    %c0_86 = arith.constant 0 : index
    %c0_87 = arith.constant 0 : index
    %89 = vector.load %arg3[%c0_86, %c0_87] : memref<48x32xf32, #tpu.memory_space<vmem>>, vector<48x32xf32>
    %cst_88 = arith.constant dense<0.000000e+00> : vector<8x32xf32>
    %90 = tpu.matmul %84, %89, %cst_88 {dimension_numbers = #tpu.dot_dimension_numbers<[1], [0], [0], [1], [0, 0, 1, 1], [], []>} : vector<8x48xf32>, vector<48x32xf32>, vector<8x32xf32> -> vector<8x32xf32>
    %c0_89 = arith.constant 0 : index
    %c0_90 = arith.constant 0 : index
    %91 = vector.load %arg4[%c0_89, %c0_90] : memref<1x32xf32, #tpu.memory_space<vmem>>, vector<1x32xf32>
    %92 = vector.broadcast %91 : vector<1x32xf32> to vector<8x32xf32>
    %93 = arith.addf %90, %92 : vector<8x32xf32>
    %c6_i32 = arith.constant 6 : i32
    %94 = arith.index_cast %c6_i32 : i32 to index
    %c0_91 = arith.constant 0 : index
    %c0_92 = arith.constant 0 : index
    %95 = vector.load %arg1[%94, %c0_91, %c0_92] : memref<8x8x16xf32, #tpu.memory_space<vmem>>, vector<1x8x16xf32>
    %96 = vector.shape_cast %95 : vector<1x8x16xf32> to vector<8x16xf32>
    %c0_93 = arith.constant 0 : index
    %c0_94 = arith.constant 0 : index
    %97 = vector.load %arg8[%c0_93, %c0_94] : memref<8x48xf32, #tpu.memory_space<vmem>>, vector<8x16xf32>
    tpu.vector_store %arg8[%c0_93, %c0_94], %96 {strides = array<i32>} : memref<8x48xf32, #tpu.memory_space<vmem>>, vector<8x16xf32>,
    %c0_95 = arith.constant 0 : index
    %c16_96 = arith.constant 16 : index
    %98 = vector.load %arg8[%c0_95, %c16_96] : memref<8x48xf32, #tpu.memory_space<vmem>>, vector<8x32xf32>
    tpu.vector_store %arg8[%c0_95, %c16_96], %93 {strides = array<i32>} : memref<8x48xf32, #tpu.memory_space<vmem>>, vector<8x32xf32>,
    %c0_97 = arith.constant 0 : index
    %c0_98 = arith.constant 0 : index
    %99 = vector.load %arg8[%c0_97, %c0_98] : memref<8x48xf32, #tpu.memory_space<vmem>>, vector<8x48xf32>
    %100 = arith.index_cast %c6_i32 : i32 to index
    %c0_99 = arith.constant 0 : index
    %c0_100 = arith.constant 0 : index
    %101 = vector.load %arg5[%100, %c0_99, %c0_100] : memref<8x8x48xf32, #tpu.memory_space<vmem>>, vector<1x8x48xf32>
    %102 = vector.shape_cast %101 : vector<1x8x48xf32> to vector<8x48xf32>
    %103 = vector.shape_cast %99 : vector<8x48xf32> to vector<1x8x48xf32>
    tpu.vector_store %arg5[%100, %c0_99, %c0_100], %103 {strides = array<i32>} : memref<8x8x48xf32, #tpu.memory_space<vmem>>, vector<1x8x48xf32>,
    %c0_101 = arith.constant 0 : index
    %c0_102 = arith.constant 0 : index
    %104 = vector.load %arg3[%c0_101, %c0_102] : memref<48x32xf32, #tpu.memory_space<vmem>>, vector<48x32xf32>
    %cst_103 = arith.constant dense<0.000000e+00> : vector<8x32xf32>
    %105 = tpu.matmul %99, %104, %cst_103 {dimension_numbers = #tpu.dot_dimension_numbers<[1], [0], [0], [1], [0, 0, 1, 1], [], []>} : vector<8x48xf32>, vector<48x32xf32>, vector<8x32xf32> -> vector<8x32xf32>
    %c0_104 = arith.constant 0 : index
    %c0_105 = arith.constant 0 : index
    %106 = vector.load %arg4[%c0_104, %c0_105] : memref<1x32xf32, #tpu.memory_space<vmem>>, vector<1x32xf32>
    %107 = vector.broadcast %106 : vector<1x32xf32> to vector<8x32xf32>
    %108 = arith.addf %105, %107 : vector<8x32xf32>
    %c7_i32 = arith.constant 7 : i32
    %109 = arith.index_cast %c7_i32 : i32 to index
    %c0_106 = arith.constant 0 : index
    %c0_107 = arith.constant 0 : index
    %110 = vector.load %arg1[%109, %c0_106, %c0_107] : memref<8x8x16xf32, #tpu.memory_space<vmem>>, vector<1x8x16xf32>
    %111 = vector.shape_cast %110 : vector<1x8x16xf32> to vector<8x16xf32>
    %c0_108 = arith.constant 0 : index
    %c0_109 = arith.constant 0 : index
    %112 = vector.load %arg8[%c0_108, %c0_109] : memref<8x48xf32, #tpu.memory_space<vmem>>, vector<8x16xf32>
    tpu.vector_store %arg8[%c0_108, %c0_109], %111 {strides = array<i32>} : memref<8x48xf32, #tpu.memory_space<vmem>>, vector<8x16xf32>,
    %c0_110 = arith.constant 0 : index
    %c16_111 = arith.constant 16 : index
    %113 = vector.load %arg8[%c0_110, %c16_111] : memref<8x48xf32, #tpu.memory_space<vmem>>, vector<8x32xf32>
    tpu.vector_store %arg8[%c0_110, %c16_111], %108 {strides = array<i32>} : memref<8x48xf32, #tpu.memory_space<vmem>>, vector<8x32xf32>,
    %c0_112 = arith.constant 0 : index
    %c0_113 = arith.constant 0 : index
    %114 = vector.load %arg8[%c0_112, %c0_113] : memref<8x48xf32, #tpu.memory_space<vmem>>, vector<8x48xf32>
    %115 = arith.index_cast %c7_i32 : i32 to index
    %c0_114 = arith.constant 0 : index
    %c0_115 = arith.constant 0 : index
    %116 = vector.load %arg5[%115, %c0_114, %c0_115] : memref<8x8x48xf32, #tpu.memory_space<vmem>>, vector<1x8x48xf32>
    %117 = vector.shape_cast %116 : vector<1x8x48xf32> to vector<8x48xf32>
    %118 = vector.shape_cast %114 : vector<8x48xf32> to vector<1x8x48xf32>
    tpu.vector_store %arg5[%115, %c0_114, %c0_115], %118 {strides = array<i32>} : memref<8x8x48xf32, #tpu.memory_space<vmem>>, vector<1x8x48xf32>,
    %c0_116 = arith.constant 0 : index
    %c0_117 = arith.constant 0 : index
    %119 = vector.load %arg3[%c0_116, %c0_117] : memref<48x32xf32, #tpu.memory_space<vmem>>, vector<48x32xf32>
    %cst_118 = arith.constant dense<0.000000e+00> : vector<8x32xf32>
    %120 = tpu.matmul %114, %119, %cst_118 {dimension_numbers = #tpu.dot_dimension_numbers<[1], [0], [0], [1], [0, 0, 1, 1], [], []>} : vector<8x48xf32>, vector<48x32xf32>, vector<8x32xf32> -> vector<8x32xf32>
    %c0_119 = arith.constant 0 : index
    %c0_120 = arith.constant 0 : index
    %121 = vector.load %arg4[%c0_119, %c0_120] : memref<1x32xf32, #tpu.memory_space<vmem>>, vector<1x32xf32>
    %122 = vector.broadcast %121 : vector<1x32xf32> to vector<8x32xf32>
    %123 = arith.addf %120, %122 : vector<8x32xf32>
    %c8_i32 = arith.constant 8 : i32
    %c0_121 = arith.constant 0 : index
    %c0_122 = arith.constant 0 : index
    %124 = vector.load %arg7[%c0_121, %c0_122] : memref<8x32xf32, #tpu.memory_space<vmem>>, vector<8x32xf32>
    tpu.vector_store %arg7[%c0_121, %c0_122], %123 {strides = array<i32>} : memref<8x32xf32, #tpu.memory_space<vmem>>, vector<8x32xf32>,
    %c0_i32_123 = arith.constant 0 : i32
    %125 = arith.cmpi eq, %arg0, %c0_i32_123 : i32
    %126 = arith.extui %125 : i1 to i32
    %c0_i32_124 = arith.constant 0 : i32
    %127 = arith.cmpi ne, %126, %c0_i32_124 : i32
    scf.if %127 {
      %c0_125 = arith.constant 0 : index
      %c0_126 = arith.constant 0 : index
      %128 = vector.load %arg6[%c0_125, %c0_126] : memref<8x32xf32, #tpu.memory_space<vmem>>, vector<8x32xf32>
      tpu.vector_store %arg6[%c0_125, %c0_126], %123 {strides = array<i32>} : memref<8x32xf32, #tpu.memory_space<vmem>>, vector<8x32xf32>,
    } else {
    }
    return
  }
  func.func @transform_0(%arg0: i32) -> (i32, i32, i32) {
    %c0_i32 = arith.constant 0 : i32
    %c0_i32_0 = arith.constant 0 : i32
    %c0_i32_1 = arith.constant 0 : i32
    return %arg0, %c0_i32, %c0_i32_0 : i32, i32, i32
  }
  func.func @transform_1(%arg0: i32) -> (i32, i32) {
    %c0_i32 = arith.constant 0 : i32
    %c0_i32_0 = arith.constant 0 : i32
    %c0_i32_1 = arith.constant 0 : i32
    return %c0_i32, %c0_i32_0 : i32, i32
  }
  func.func @transform_2(%arg0: i32) -> (i32, i32) {
    %c0_i32 = arith.constant 0 : i32
    %c0_i32_0 = arith.constant 0 : i32
    %c0_i32_1 = arith.constant 0 : i32
    return %c0_i32, %c0_i32_0 : i32, i32
  }
  func.func @transform_3(%arg0: i32) -> (i32, i32) {
    %c0_i32 = arith.constant 0 : i32
    %c0_i32_0 = arith.constant 0 : i32
    %c0_i32_1 = arith.constant 0 : i32
    return %c0_i32, %c0_i32_0 : i32, i32
  }
  func.func @transform_4(%arg0: i32) -> (i32, i32, i32) {
    %c0_i32 = arith.constant 0 : i32
    %c0_i32_0 = arith.constant 0 : i32
    %c0_i32_1 = arith.constant 0 : i32
    return %arg0, %c0_i32, %c0_i32_0 : i32, i32, i32
  }
  func.func @transform_5(%arg0: i32) -> (i32, i32) {
    %c0_i32 = arith.constant 0 : i32
    %c0_i32_0 = arith.constant 0 : i32
    %c0_i32_1 = arith.constant 0 : i32
    return %c0_i32, %c0_i32_0 : i32, i32
  }
}

</mosaic_0001>

<bundles_post_ra>
// kernel: tpu_custom_call.1
= control target key start
LH: loop header
LB: loop body
LE: loop exit
PB: predicated region body
PF: predicated region fallthrough
CT: control target
= control target key end

     0   :  { %11 = vsyncpa [#allocation5], 0  ;;  %vm26_vm0 = vcmask 261120   ;;  %vm30_vm1 = vcmask 130048   ;;  %s655_s0 = inlined_call_operand.vmem [shape: f32[8,8,16], index: 0, kind: input, shape index: {}]   ;;  %s656_s1 = inlined_call_operand.vmem [shape: f32[8,32], index: 1, kind: input, shape index: {}]   ;;  %s657_s2 = inlined_call_operand.vmem [shape: f32[48,32], index: 2, kind: input, shape index: {}]   ;;  %s658_s3 = inlined_call_operand.vmem [shape: f32[1,32], index: 3, kind: input, shape index: {}]   ;;  %s659_s4 = inlined_call_operand.hbm [shape: f32[8,8,48], index: 4, kind: output, shape index: {0}]   ;;  %s660_s5 = inlined_call_operand.hbm [shape: f32[8,32], index: 5, kind: output, shape index: {1}]  }
   0x1   :  { %v25_v0 = vld [vmem:[%s656_s1] sm:$0xff]  ;;  %v46_v1 = vld [vmem:[%s657_s2 + $0x28] sm:$0xff] }
   0x2   :  { %v45_v2 = vld [vmem:[%s657_s2 + $0x20] sm:$0xff]  ;;  %27 = vst.msk [vmem:[#allocation2] sm:$0xff] %vm26_vm0, %v25_v0  ;;  %64 = vmatpush.msra.mxu0 %v46_v1  ;;  %108 = vmatpush.msra.mxu1 %v46_v1 }
   0x3   :  { %v29_v3 = vld [vmem:[%s655_s0] sm:$0xff]  ;;  %152 = vmatpush.msra.mxu2 %v46_v1  ;;  %196 = vmatpush.msra.mxu3 %v46_v1 }
   0x4   :  { %31 = vst.msk [vmem:[#allocation3] sm:$0xff] %vm30_vm1, %v29_v3  ;;  %65 = vmatpush.msra.mxu0 %v45_v2  ;;  %109 = vmatpush.msra.mxu1 %v45_v2 }
   0x5   :  { %153 = vmatpush.msra.mxu2 %v45_v2  ;;  %197 = vmatpush.msra.mxu3 %v45_v2 }
   0x6   :  { %12 = vsyncpa [#allocation7], 0  ;;  %s502_s1 = smov 16   ;;  %v44_v5 = vld [vmem:[%s657_s2 + $0x18] sm:$0xff]  ;;  %v43_v6 = vld [vmem:[%s657_s2 + $0x10] sm:$0xff]  ;;  %vm36_vm2 = vcmask 392320  }
   0x7   :  { %66 = vmatpush.msra.mxu0 %v44_v5  ;;  %110 = vmatpush.msra.mxu1 %v44_v5  ;;  %v42_v7 = vld [vmem:[%s657_s2 + $0x8] sm:$0xff]  ;;  %v41_v8 = vld [vmem:[%s657_s2] sm:$0xff]  ;;  %vm39_vm3 = vcmask 392192   ;;  %v425_v17 = vld [vmem:[%s655_s0 + $0x10] sm:$0xff]  ;;  %s503_s10 = smov [#allocation4]   ;;  %s394_s13 = sshll.u32 %s659_s4, 4  ;;  %s395_s13 = int_to_ptr.hbm [resolvable:$true] %s394_s13 }
   0x8   :  { %154 = vmatpush.msra.mxu2 %v44_v5  ;;  %198 = vmatpush.msra.mxu3 %v44_v5  ;;  %v423_v11 = vld [vmem:[%s655_s0 + $0x8] sm:$0xff]  ;;  %v442_v12 = vld [vmem:[%s658_s3] ss:$0 sm:$0xff]  ;;  %v427_v23 = vld [vmem:[%s655_s0 + $0x18] sm:$0xff]  ;;  %s504_s14 = smov 128   ;;  %s505_s15 = smov 8  }
   0x9   :  { %v28_v4 = vld [vmem:[#allocation2] sm:$0xff]  ;;  %67 = vmatpush.msra.mxu0 %v43_v6  ;;  %111 = vmatpush.msra.mxu1 %v43_v6  ;;  %v431_v35 = vld [vmem:[%s655_s0 + $0x28] sm:$0xff]  ;;  %v433_v41 = vld [vmem:[%s655_s0 + $0x30] sm:$0xff]  ;;  %s506_s17 = smov [#allocation6]   ;;  %s408_s21 = sshll.u32 %s660_s5, 4  ;;  %s409_s21 = int_to_ptr.hbm [resolvable:$true] %s408_s21 }
   0xa   :  { %33 = vrot.lane.b32.xlu0 %v28_v4, %s502_s1  ;;  %155 = vmatpush.msra.mxu2 %v43_v6  ;;  %v443_v18 = vld [vmem:[%s658_s3] ss:$0 sm:$0xff]  ;;  %v435_v47 = vld [vmem:[%s655_s0 + $0x38] sm:$0xff]  ;;  %s406_s18 = sshll.u32 %s506_s17, 4  ;;  %s407_s18 = int_to_ptr.vmem [resolvable:$true] %s406_s18 }
   0xb   :  { %199 = vmatpush.msra.mxu3 %v43_v6  ;;  %68 = vmatpush.msra.mxu0 %v42_v7  ;;  %v444_v24 = vld [vmem:[%s658_s3] ss:$0 sm:$0xff] }
   0xc   :  { %112 = vmatpush.msra.mxu1 %v42_v7  ;;  %156 = vmatpush.msra.mxu2 %v42_v7  ;;  %v429_v29 = vld [vmem:[%s655_s0 + $0x20] sm:$0xff]  ;;  %s392_s0 = sshll.u32 %s503_s10, 4  ;;  %s393_s0 = int_to_ptr.vmem [resolvable:$true] %s392_s0 }
   0xd   :  { %200 = vmatpush.msra.mxu3 %v42_v7  ;;  %69 = vmatpush.msra.mxu0 %v41_v8  ;;  %v445_v30 = vld [vmem:[%s658_s3] ss:$0 sm:$0xff] }
   0xe   :  { %113 = vmatpush.msra.mxu1 %v41_v8  ;;  %157 = vmatpush.msra.mxu2 %v41_v8  ;;  %v446_v36 = vld [vmem:[%s658_s3] ss:$0 sm:$0xff] }
   0xf   :  { %201 = vmatpush.msra.mxu3 %v41_v8  ;;  %240 = vmatpush.msrb.mxu0 %v46_v1  ;;  %v447_v42 = vld [vmem:[%s658_s3] ss:$0 sm:$0xff] }
  0x10   :  { %284 = vmatpush.msrb.mxu1 %v46_v1  ;;  %328 = vmatpush.msrb.mxu2 %v46_v1  ;;  %v448_v48 = vld [vmem:[%s658_s3] ss:$0 sm:$0xff] }
  0x11   :  { %372 = vmatpush.msrb.mxu3 %v46_v1  ;;  %241 = vmatpush.msrb.mxu0 %v45_v2  ;;  %v449_v53 = vld [vmem:[%s658_s3] ss:$0 sm:$0xff] }
  0x12   :  { %285 = vmatpush.msrb.mxu1 %v45_v2  ;;  %329 = vmatpush.msrb.mxu2 %v45_v2 }
  0x13   :  { %373 = vmatpush.msrb.mxu3 %v45_v2  ;;  %242 = vmatpush.msrb.mxu0 %v44_v5 }
  0x14   :  { %286 = vmatpush.msrb.mxu1 %v44_v5  ;;  %330 = vmatpush.msrb.mxu2 %v44_v5 }
  0x15   :  { %374 = vmatpush.msrb.mxu3 %v44_v5  ;;  %243 = vmatpush.msrb.mxu0 %v43_v6 }
  0x16   :  { %287 = vmatpush.msrb.mxu1 %v43_v6  ;;  %331 = vmatpush.msrb.mxu2 %v43_v6 }
  0x17   :  { %375 = vmatpush.msrb.mxu3 %v43_v6  ;;  %244 = vmatpush.msrb.mxu0 %v42_v7 }
  0x18   :  { %288 = vmatpush.msrb.mxu1 %v42_v7  ;;  %332 = vmatpush.msrb.mxu2 %v42_v7 }
  0x19   :  { %376 = vmatpush.msrb.mxu3 %v42_v7  ;;  %245 = vmatpush.msrb.mxu0 %v41_v8 }
  0x1a   :  { %289 = vmatpush.msrb.mxu1 %v41_v8  ;;  %333 = vmatpush.msrb.mxu2 %v41_v8 }
  0x1b   :  { %377 = vmatpush.msrb.mxu3 %v41_v8 }
  0x7c   :  { %v34_v9 = vpop.permute.xlu0 %33 }
  0x7d   :  { %37 = vst.msk [vmem:[#allocation3] sm:$0xff] %vm36_vm2, %v34_v9 }
  0x84   :  { %v38_v10 = vld [vmem:[#allocation3] sm:$0xff] }
  0x85   :  { %40 = vst.msk [vmem:[#allocation4] sm:$0xff] %vm39_vm3, %v38_v10  ;;  %422 = vmatmul.msk.f32.vlgmr.msra.gmra.mxu0 %vm39_vm3, %v38_v10 }
  0x86   :  { %76 = vst.msk [vmem:[#allocation3] sm:$0xff] %vm30_vm1, %v423_v11 }
 0x102   :  { %v71_v13 = vpop.f32.mrf.mxu0 }
 0x103   :  { %v72_v14 = vadd.f32 %v442_v12, %v71_v13 }
 0x105   :  { %78 = vrot.lane.b32.xlu0 %v72_v14, %s502_s1 }
 0x177   :  { %v79_v15 = vpop.permute.xlu0 %78 }
 0x178   :  { %81 = vst.msk [vmem:[#allocation3] sm:$0xff] %vm36_vm2, %v79_v15 }
 0x17f   :  { %v82_v16 = vld [vmem:[#allocation3] sm:$0xff] }
 0x180   :  { %84 = vst.msk [vmem:[#allocation4 + $0x8] sm:$0xff] %vm39_vm3, %v82_v16  ;;  %424 = vmatmul.msk.f32.vlgmr.msra.gmra.mxu1 %vm39_vm3, %v82_v16 }
 0x181   :  { %120 = vst.msk [vmem:[#allocation3] sm:$0xff] %vm30_vm1, %v425_v17 }
 0x1fd   :  { %v115_v19 = vpop.f32.mrf.mxu1 }
 0x1fe   :  { %v116_v20 = vadd.f32 %v443_v18, %v115_v19 }
 0x200   :  { %122 = vrot.lane.b32.xlu1 %v116_v20, %s502_s1 }
 0x272   :  { %v123_v21 = vpop.permute.xlu1 %122 }
 0x273   :  { %125 = vst.msk [vmem:[#allocation3] sm:$0xff] %vm36_vm2, %v123_v21 }
 0x27a   :  { %v126_v22 = vld [vmem:[#allocation3] sm:$0xff] }
 0x27b   :  { %128 = vst.msk [vmem:[#allocation4 + $0x10] sm:$0xff] %vm39_vm3, %v126_v22  ;;  %426 = vmatmul.msk.f32.vlgmr.msra.gmra.mxu2 %vm39_vm3, %v126_v22 }
 0x27c   :  { %164 = vst.msk [vmem:[#allocation3] sm:$0xff] %vm30_vm1, %v427_v23 }
 0x2fe   :  { %v159_v25 = vpop.f32.mrf.mxu2 }
 0x2ff   :  { %v160_v26 = vadd.f32 %v444_v24, %v159_v25 }
 0x301   :  { %166 = vrot.lane.b32.xlu1 %v160_v26, %s502_s1 }
 0x373   :  { %v167_v27 = vpop.permute.xlu1 %166 }
 0x374   :  { %169 = vst.msk [vmem:[#allocation3] sm:$0xff] %vm36_vm2, %v167_v27 }
 0x37b   :  { %v170_v28 = vld [vmem:[#allocation3] sm:$0xff] }
 0x37c   :  { %172 = vst.msk [vmem:[#allocation4 + $0x18] sm:$0xff] %vm39_vm3, %v170_v28  ;;  %428 = vmatmul.msk.f32.vlgmr.msra.gmra.mxu3 %vm39_vm3, %v170_v28 }
 0x37d   :  { %208 = vst.msk [vmem:[#allocation3] sm:$0xff] %vm30_vm1, %v429_v29 }
 0x3ff   :  { %v203_v31 = vpop.f32.mrf.mxu3 }
 0x400   :  { %v204_v32 = vadd.f32 %v445_v30, %v203_v31 }
 0x402   :  { %210 = vrot.lane.b32.xlu2 %v204_v32, %s502_s1 }
 0x45c   :  { %v211_v33 = vpop.permute.xlu2 %210 }
 0x45d   :  { %213 = vst.msk [vmem:[#allocation3] sm:$0xff] %vm36_vm2, %v211_v33 }
 0x464   :  { %v214_v34 = vld [vmem:[#allocation3] sm:$0xff] }
 0x465   :  { %216 = vst.msk [vmem:[#allocation4 + $0x20] sm:$0xff] %vm39_vm3, %v214_v34  ;;  %430 = vmatmul.msk.f32.vlgmr.msrb.gmra.mxu0 %vm39_vm3, %v214_v34 }
 0x466   :  { %252 = vst.msk [vmem:[#allocation3] sm:$0xff] %vm30_vm1, %v431_v35 }
 0x4e2   :  { %v247_v37 = vpop.f32.mrf.mxu0 }
 0x4e3   :  { %v248_v38 = vadd.f32 %v446_v36, %v247_v37 }
 0x4e5   :  { %254 = vrot.lane.b32.xlu2 %v248_v38, %s502_s1 }
 0x53f   :  { %v255_v39 = vpop.permute.xlu2 %254 }
 0x540   :  { %257 = vst.msk [vmem:[#allocation3] sm:$0xff] %vm36_vm2, %v255_v39 }
 0x547   :  { %v258_v40 = vld [vmem:[#allocation3] sm:$0xff] }
 0x548   :  { %260 = vst.msk [vmem:[#allocation4 + $0x28] sm:$0xff] %vm39_vm3, %v258_v40  ;;  %432 = vmatmul.msk.f32.vlgmr.msrb.gmra.mxu1 %vm39_vm3, %v258_v40 }
 0x549   :  { %296 = vst.msk [vmem:[#allocation3] sm:$0xff] %vm30_vm1, %v433_v41 }
 0x5c5   :  { %v291_v43 = vpop.f32.mrf.mxu1 }
 0x5c6   :  { %v292_v44 = vadd.f32 %v447_v42, %v291_v43 }
 0x5c8   :  { %298 = vrot.lane.b32.xlu0 %v292_v44, %s502_s1 }
 0x63a   :  { %v299_v45 = vpop.permute.xlu0 %298 }
 0x63b   :  { %301 = vst.msk [vmem:[#allocation3] sm:$0xff] %vm36_vm2, %v299_v45 }
 0x642   :  { %v302_v46 = vld [vmem:[#allocation3] sm:$0xff] }
 0x643   :  { %304 = vst.msk [vmem:[#allocation4 + $0x30] sm:$0xff] %vm39_vm3, %v302_v46  ;;  %434 = vmatmul.msk.f32.vlgmr.msrb.gmra.mxu2 %vm39_vm3, %v302_v46 }
 0x644   :  { %340 = vst.msk [vmem:[#allocation3] sm:$0xff] %vm30_vm1, %v435_v47 }
 0x6c6   :  { %v335_v49 = vpop.f32.mrf.mxu2 }
 0x6c7   :  { %v336_v50 = vadd.f32 %v448_v48, %v335_v49 }
 0x6c9   :  { %342 = vrot.lane.b32.xlu1 %v336_v50, %s502_s1 }
 0x73b   :  { %v343_v51 = vpop.permute.xlu1 %342 }
 0x73c   :  { %345 = vst.msk [vmem:[#allocation3] sm:$0xff] %vm36_vm2, %v343_v51 }
 0x743   :  { %v346_v52 = vld [vmem:[#allocation3] sm:$0xff] }
 0x744   :  { %348 = vst.msk [vmem:[#allocation4 + $0x38] sm:$0xff] %vm39_vm3, %v346_v52  ;;  %436 = vmatmul.msk.f32.vlgmr.msrb.gmra.mxu3 %vm39_vm3, %v346_v52 }
 0x745   :  { %400 = dma.vmem_to_hbm [thread:$0]  %s393_s0, 1024, %s395_s13, [#allocation5], %s504_s14, %s504_s14, %s505_s15  }
 0x7c7   :  { %v379_v54 = vpop.f32.mrf.mxu3 }
 0x7c8   :  { %v380_v55 = vadd.f32 %v449_v53, %v379_v54 }
 0x7ca   :  { %383 = vst.msk [vmem:[#allocation2] sm:$0xff] %vm26_vm0, %v380_v55 }
 0x7cb   :  { %387 = vst.msk [vmem:[#allocation6] sm:$0xff] %vm26_vm0, %v380_v55 }
 0x7cc   :  { %411 = dma.vmem_to_hbm [thread:$0]  %s407_s18, 128, %s409_s21, [#allocation7]  }
 0x7cd   :  { %498 = dma.done.wait [#allocation5], 1024  }
 0x7ce   :  { %499 = vsyncadd [#allocation5], 4294966272 }
 0x7cf   :  { %500 = dma.done.wait [#allocation7], 128  }
 0x7d0   :  { %501 = vsyncadd [#allocation7], 4294967168 }
 0x7d1   :  { %420 = vsyncpa [#allocation5], 1 }
 0x7d2   :  { %421 = vsyncpa [#allocation7], 1 }

</bundles_post_ra>
